<compile_context>
chip_gen: v7x
topology: tpu7x:2x2x1
jax: 0.10.0
libtpu: 0.0.40
codegen_flags: <defaults>
</compile_context>

<pallas_src>
import jax
import jax.numpy as jnp
from jax.experimental import pallas as pl
from jax.experimental.pallas import tpu as pltpu


# ----------------------------------------------------------------------------
# Pallas kernel
# ----------------------------------------------------------------------------

def _qprelu_kernel(x_ref, a_ref, o_ref):
    """PReLU on one (TM, TL) tile.

    x_ref: (TM, TL)  activations (rows = flattened N*C, lanes = flattened H*W)
    a_ref: (TM, 1)   per-row (i.e. per-channel) alpha, broadcast along lanes
    o_ref: (TM, TL)
    """
    x = x_ref[...]
    alpha = a_ref[...]                       # (TM, 1) -> lane broadcast
    o_ref[...] = jnp.where(x >= 0, x, alpha * x).astype(o_ref.dtype)


# ----------------------------------------------------------------------------
# Wrapper
# ----------------------------------------------------------------------------

def _round_up(x, m):
    return ((x + m - 1) // m) * m


def _round_down(x, m):
    return max(m, (x // m) * m)


def qprelu(x, alpha):
    """QPReLU forward.

    x:     (N, C, H, W) float tensor (PyTorch NCHW layout).
    alpha: (num_parameters,) PReLU slope, num_parameters in {1, C}.
    Returns (N, C, H, W).
    """
    N, C, H, W = x.shape
    M, L = N * C, H * W
    itemsize = jnp.dtype(x.dtype).itemsize

    # ---- lane-dense 2-D view: rows = N*C (sublanes), lanes = H*W ------------
    x2 = x.reshape(M, L)

    a = jnp.asarray(alpha, x.dtype).reshape(-1)
    a_c = jnp.broadcast_to(a, (C,)) if a.shape[0] == 1 else a   # per-channel slope
    a_rows = jnp.tile(a_c, (N,)).reshape(M, 1)                  # alpha per row

    # ---- tiling: aligned blocks, ~2 MiB/buffer VMEM budget, parallel grid ---
    sub_align = max(8, 32 // itemsize)       # 8 (f32), 16 (bf16), 32 (int8)
    Mp = _round_up(M, sub_align)
    Lp = _round_up(L, 128)

    budget_elems = (2 * 1024 * 1024) // itemsize   # ~2 MiB per block buffer
    TM = min(Mp, 512)                              # multiple of sub_align
    TL = min(Lp, _round_down(budget_elems // TM, 128))

    Mp = _round_up(Mp, TM)
    Lp = _round_up(Lp, TL)

    xp, ap = x2, a_rows
    if (Mp, Lp) != (M, L):
        xp = jnp.pad(x2, ((0, Mp - M), (0, Lp - L)))
        ap = jnp.pad(a_rows, ((0, Mp - M), (0, 0)))

    grid = (Mp // TM, Lp // TL)
    cost = pl.CostEstimate(
        flops=3 * Mp * Lp,                   # cmp + mul + select per element
        transcendentals=0,
        bytes_accessed=(2 * Mp * Lp + Mp) * itemsize,
    )

    out = pl.pallas_call(
        _qprelu_kernel,
        out_shape=jax.ShapeDtypeStruct((Mp, Lp), x.dtype),
        grid=grid,
        in_specs=[
            pl.BlockSpec((TM, TL), lambda i, j: (i, j)),
            pl.BlockSpec((TM, 1), lambda i, j: (i, 0)),
        ],
        out_specs=pl.BlockSpec((TM, TL), lambda i, j: (i, j)),
        compiler_params=pltpu.CompilerParams(
            dimension_semantics=("parallel", "parallel")),
        cost_estimate=cost,
    )(xp, ap)

    if (Mp, Lp) != (M, L):
        out = out[:M, :L]
    return out.reshape(N, C, H, W)


# ----------------------------------------------------------------------------
# Main
# ----------------------------------------------------------------------------

if __name__ == "__main__":
    key = jax.random.PRNGKey(0)
    kx, _ = jax.random.split(key)

    # PyTorch-style NCHW input: batch=2, channels=4, 16x16 spatial.
    N, C, H, W = 2, 4, 16, 16
    x = jax.random.normal(kx, (N, C, H, W), jnp.float32)
    # Per-channel PReLU weight, init=0.25 as in the module.
    alpha = jnp.full((C,), 0.25, jnp.float32)

    fwd = jax.jit(qprelu)
    y = jax.block_until_ready(fwd(x, alpha))

    # Reference (float semantics of the module): relu(x) + alpha * min(x, 0).
    ref = jnp.maximum(x, 0.0) + alpha.reshape(1, C, 1, 1) * jnp.minimum(x, 0.0)

    assert y.shape == x.shape
    assert bool(jnp.all(jnp.isfinite(y)))
    assert bool(jnp.allclose(y, ref, atol=1e-6, rtol=1e-6))
    print("KERNEL_OK")
</pallas_src>

<mosaic_0001>
module attributes {stable_mosaic.version = 11 : i64} {
  func.func @_qprelu_kernel(%arg0: i32, %arg1: i32, %arg2: memref<8x256xf32, #tpu.memory_space<vmem>>, %arg3: memref<8x1xf32, #tpu.memory_space<vmem>>, %arg4: memref<8x256xf32, #tpu.memory_space<vmem>>) attributes {dimension_semantics = [#tpu.dimension_semantics<parallel>, #tpu.dimension_semantics<parallel>], iteration_bounds = array<i64: 1, 1>, scalar_prefetch = 0 : i64, scratch_operands = 0 : i64, tpu.core_type = #tpu.core_type<tc>, window_params = [{transform_indices = @transform_0, window_bounds = array<i64: 8, 256>}, {transform_indices = @transform_1, window_bounds = array<i64: 8, 1>}, {transform_indices = @transform_2, window_bounds = array<i64: 8, 256>}]} {
    %c0 = arith.constant 0 : index
    %c0_0 = arith.constant 0 : index
    %0 = vector.load %arg2[%c0, %c0_0] : memref<8x256xf32, #tpu.memory_space<vmem>>, vector<8x256xf32>
    %c0_1 = arith.constant 0 : index
    %c0_2 = arith.constant 0 : index
    %1 = vector.load %arg3[%c0_1, %c0_2] : memref<8x1xf32, #tpu.memory_space<vmem>>, vector<8x1xf32>
    %cst = arith.constant 0.000000e+00 : f32
    %2 = vector.broadcast %cst : f32 to vector<8x256xf32>
    %3 = arith.cmpf oge, %0, %2 : vector<8x256xf32>
    %4 = vector.broadcast %1 : vector<8x1xf32> to vector<8x256xf32>
    %5 = arith.mulf %4, %0 : vector<8x256xf32>
    %6 = arith.select %3, %0, %5 : vector<8x256xi1>, vector<8x256xf32>
    %c0_3 = arith.constant 0 : index
    %c0_4 = arith.constant 0 : index
    %7 = vector.load %arg4[%c0_3, %c0_4] : memref<8x256xf32, #tpu.memory_space<vmem>>, vector<8x256xf32>
    tpu.vector_store %arg4[%c0_3, %c0_4], %6 {strides = array<i32>} : memref<8x256xf32, #tpu.memory_space<vmem>>, vector<8x256xf32>,
    return
  }
  func.func @transform_0(%arg0: i32, %arg1: i32) -> (i32, i32) {
    %c0_i32 = arith.constant 0 : i32
    return %arg0, %arg1 : i32, i32
  }
  func.func @transform_1(%arg0: i32, %arg1: i32) -> (i32, i32) {
    %c0_i32 = arith.constant 0 : i32
    %c0_i32_0 = arith.constant 0 : i32
    return %arg0, %c0_i32 : i32, i32
  }
  func.func @transform_2(%arg0: i32, %arg1: i32) -> (i32, i32) {
    %c0_i32 = arith.constant 0 : i32
    return %arg0, %arg1 : i32, i32
  }
}

</mosaic_0001>

<bundles_post_ra>
// kernel: tile.8
= control target key start
LH: loop header
LB: loop body
LE: loop exit
PB: predicated region body
PF: predicated region fallthrough
CT: control target
= control target key end

     0   :  { %s22_s0 = inlined_call_operand.vmem [shape: f32[4], index: 0, kind: input, shape index: {}]   ;;  %s23_s1 = inlined_call_operand.vmem [shape: f32[2,4], index: 1, kind: output, shape index: {}]  }
   0x1   :  { %v4_v0 = vld [vmem:[%s22_s0] ss:$0 sm:$0xff] }
   0x2   :  { %5 = vst [vmem:[%s23_s1] sm:$0x3] %v4_v0 }

// kernel: tile.0
= control target key start
LH: loop header
LB: loop body
LE: loop exit
PB: predicated region body
PF: predicated region fallthrough
CT: control target
= control target key end

     0   :  { %s34_s8 = smov 125   ;;  %vm7_vm0 = vcmask 7168   ;;  %s35_s11 = smov 126   ;;  %s61_s0 = inlined_call_operand.vmem [shape: f32[2,4], index: 0, kind: input, shape index: {}]   ;;  %s62_s1 = inlined_call_operand.vmem [shape: f32[8,1], index: 1, kind: output, shape index: {}]  }
   0x1   :  { %v4_v0 = vld [vmem:[%s61_s0] sm:$0x3]  ;;  %s33_s0 = smov 127  }
   0x2   :  { %5 = vst [vmem:[#allocation0] sm:$0x3] %v4_v0 }
   0x9   :  { %v9_v1 = vld [vmem:[#allocation0] sm:$0x3]  }
   0xa   :  { %v21_v2 = vld [vmem:[#allocation0] sm:$0x3]   ;;  %10 = vrot.lane.b32.xlu0 %v9_v1, %s33_s0 }
   0xb   :  { %22 = vrot.lane.b32.xlu1 %v21_v2, %s34_s8  ;;  %v6_v3 = vld [vmem:[#allocation0] sm:$0x3]  }
   0xc   :  { %v15_v4 = vld [vmem:[#allocation0] sm:$0x3]   ;;  %8 = vst.msk [vmem:[%s62_s1] ss:$4 sm:$0x3] %vm7_vm0, %v6_v3  }
   0xe   :  { %16 = vrot.lane.b32.xlu0 %v15_v4, %s35_s11 }
  0x7c   :  { %v11_v5 = vpop.permute.xlu0 %10  }
  0x7d   :  { %v23_v6 = vpop.permute.xlu1 %22   ;;  %27 = vst.msk [vmem:[%s62_s1 + $0x1] ss:$4 sm:$0x3] %vm7_vm0, %v11_v5  }
  0x7e   :  { %29 = vst.msk [vmem:[%s62_s1 + $0x3] ss:$4 sm:$0x3] %vm7_vm0, %v23_v6  }
  0x80   :  { %v17_v7 = vpop.permute.xlu0 %16  }
  0x81   :  { %28 = vst.msk [vmem:[%s62_s1 + $0x2] ss:$4 sm:$0x3] %vm7_vm0, %v17_v7  }

// kernel: qprelu.1
= control target key start
LH: loop header
LB: loop body
LE: loop exit
PB: predicated region body
PF: predicated region fallthrough
CT: control target
= control target key end

     0   :  { %v33_v0 = vmov 0   ;;  %s64_s1 = inlined_call_operand.vmem [shape: f32[8,1], index: 1, kind: input, shape index: {}]   ;;  %s65_s0 = inlined_call_operand.vmem [shape: f32[8,256], index: 0, kind: input, shape index: {}]   ;;  %s66_s2 = inlined_call_operand.vmem [shape: f32[8,256], index: 2, kind: output, shape index: {}]  }
   0x1   :  { %32 = vset.pattern.permute.xlu0 %v33_v0  ;;  %v13_v1 = vld [vmem:[%s64_s1] sm:$0xff]  ;;  %v12_v3 = vld [vmem:[%s65_s0 + $0x8] sm:$0xff] }
   0x2   :  { %18 = vperm.xlu0 %32, %v13_v1   ;;  %v11_v2 = vld [vmem:[%s65_s0] sm:$0xff]  ;;  %vm15_vm1 = vcmp.ge.f32.partialorder %v12_v3, 0.0 }
   0x3   :  { %vm14_vm0 = vcmp.ge.f32.partialorder %v11_v2, 0.0 }
  0x81   :  { %v19_v4 = vpop.permute.xlu0 %18 }
  0x82   :  { %v21_v5 = vmul.f32 %v19_v4, %v11_v2  ;;  %v22_v6 = vmul.f32 %v19_v4, %v12_v3 }
  0x84   :  { %v23_v7 = vsel %vm14_vm0, %v11_v2, %v21_v5  ;;  %v24_v8 = vsel %vm15_vm1, %v12_v3, %v22_v6 }
  0x85   :  { %25 = vst [vmem:[%s66_s2] sm:$0xff] %v23_v7  ;;  %26 = vst [vmem:[%s66_s2 + $0x8] sm:$0xff] %v24_v8 }

</bundles_post_ra>
